<compile_context>
chip_gen: v7x
topology: tpu7x:2x2x1
jax: 0.10.0
libtpu: 0.0.40
codegen_flags: <defaults>
</compile_context>

<pallas_src>
import math
import functools

import jax
import jax.numpy as jnp
from jax import lax
from jax.experimental import pallas as pl
from jax.experimental.pallas import tpu as pltpu


# ----------------------------- chip-aware knobs -------------------------------

def _mxu_tile():
    # v6e/v7x MXUs are 2x256x256 -> prefer 256-wide q/kv tiles; v5e (4x128x128)
    # and older prefer 128.
    kind = jax.devices()[0].device_kind.lower()
    return 128 if any(t in kind for t in ("v2", "v3", "v4", "v5")) else 256


def _vmem_limit_bytes():
    # Size the scoped-VMEM request against the chip's physical capacity
    # (64 MiB on v7x vs 128 MiB on v5e/v6e) instead of assuming 32/128 MiB.
    cap = 64 * 1024 * 1024
    try:
        cap = int(pltpu.get_tpu_info().vmem_capacity_bytes)
    except Exception:
        pass
    return min(64 * 1024 * 1024, (3 * cap) // 4)


# ----------------------- fused attention-block kernel ------------------------

def _attn_block_kernel(xq_ref, xkv_ref, wqkv_ref, wo_ref, o_ref, acc_ref, *,
                       head_dim, kv_tile, causal):
    # xq_ref:   (1, TQ, H)  bf16 activations for this q-row tile
    # xkv_ref:  (1, S,  H)  bf16 activations for the K/V rows (block constant
    #                       across q-tile and head axes -> DMA'd once per batch)
    # wqkv_ref: (1, H, 3D)  this head's fused [Wq | Wk | Wv] (bf16, Q pre-scaled)
    # wo_ref:   (1, D, H)   this head's rows of the output projection (bf16)
    # o_ref:    (1, TQ, H)  bf16 output block (written on the last head)
    # acc_ref:  (TQ, H)     fp32 VMEM accumulator, persists across the head axis
    qi = pl.program_id(1)
    h = pl.program_id(2)
    TQ = xq_ref.shape[1]
    S = xkv_ref.shape[1]
    D = head_dim

    @pl.when(h == 0)
    def _init():
        acc_ref[...] = jnp.zeros_like(acc_ref)

    wqkv = wqkv_ref[0]                                       # (H, 3D) bf16
    # Q projection only needs this q-row tile of x; scale already folded in Wq.
    q = jnp.dot(xq_ref[0], wqkv[:, :D],
                preferred_element_type=jnp.float32).astype(jnp.bfloat16)   # (TQ, D)
    # K/V projection over all rows; cast to bf16 once so the fp32 result dies.
    # TODO(synk): at production S, kv-tile xkv on an extra grid/fori axis and
    # skip fully-masked causal KV tiles instead of materializing all S rows.
    kv = jnp.dot(xkv_ref[0], wqkv[:, D:],
                 preferred_element_type=jnp.float32).astype(jnp.bfloat16)  # (S, 2D)
    k = kv[:, :D]
    v = kv[:, D:]

    num_kv_tiles = S // kv_tile
    # Computed once per grid step (per head), not re-emitted per head as before.
    row_ids = qi * TQ + lax.broadcasted_iota(jnp.int32, (TQ, kv_tile), 0)

    # Online-softmax (flash) state, fp32 (v5e has no bf16 VPU/EUP).
    m = jnp.full((TQ, 1), -jnp.inf, jnp.float32)
    l = jnp.zeros((TQ, 1), jnp.float32)
    ctx = jnp.zeros((TQ, D), jnp.float32)

    # Single statically-unrolled iteration at toy shapes; for large S this loop
    # becomes a lax.fori_loop over VMEM-resident K/V tiles (or a grid axis).
    for t in range(num_kv_tiles):
        k_t = k[t * kv_tile:(t + 1) * kv_tile, :]
        v_t = v[t * kv_tile:(t + 1) * kv_tile, :]
        # Contract on head_dim of both operands: no in-kernel K transpose.
        s = lax.dot_general(q, k_t, (((1,), (1,)), ((), ())),
                            preferred_element_type=jnp.float32)     # (TQ, Tk)
        if causal:
            col_ids = t * kv_tile + lax.broadcasted_iota(
                jnp.int32, (TQ, kv_tile), 1)
            s = jnp.where(col_ids <= row_ids, s, jnp.float32(-1e30))

        m_new = jnp.maximum(m, jnp.max(s, axis=-1, keepdims=True))
        alpha = jnp.exp(m - m_new)
        p = jnp.exp(s - m_new)
        l = alpha * l + jnp.sum(p, axis=-1, keepdims=True)
        ctx = alpha * ctx + lax.dot_general(
            p.astype(jnp.bfloat16), v_t, (((1,), (0,)), ((), ())),
            preferred_element_type=jnp.float32)
        m = m_new

    # EUP reciprocal + one Newton step: keeps the divide off the VPU while
    # removing the ~1e-2 bias of the raw approximation.
    r = pl.reciprocal(l, approx=True)
    r = r * (2.0 - l * r)
    ctx_h = (ctx * r).astype(jnp.bfloat16)                           # (TQ, D)

    # Per-head output-projection contribution, accumulated in fp32 scratch.
    acc_ref[...] += jnp.dot(ctx_h, wo_ref[0],
                            preferred_element_type=jnp.float32)

    @pl.when(h == pl.num_programs(2) - 1)
    def _finalize():
        # Single full-tile, lane-dense store (v5e has one vector-store slot).
        o_ref[0] = acc_ref[...].astype(o_ref.dtype)


def fused_attention_block(x, w_qkv_heads, w_o_heads, *, causal=True):
    """Full attention block (QKV proj + MHA + output proj) as one pallas_call.

    x:            (B, S, H)     bf16 (cast if not)
    w_qkv_heads:  (nh, H, 3*D)  bf16, per-head [Wq | Wk | Wv], Wq pre-scaled
    w_o_heads:    (nh, D, H)    bf16, per-head rows of W_o
    returns       (B, S, H)     bf16
    """
    B, S, H = x.shape
    nh, H2, threeD = w_qkv_heads.shape
    D = threeD // 3
    assert H2 == H and nh * D == H and w_o_heads.shape == (nh, D, H)
    x = x.astype(jnp.bfloat16)

    tile = _mxu_tile()                       # 256 on v6e/v7x, 128 on v5e/older
    tq = min(S, tile)
    kv_tile = min(S, tile)
    assert S % tq == 0 and S % kv_tile == 0
    nq = S // tq

    kernel = functools.partial(_attn_block_kernel,
                               head_dim=D, kv_tile=kv_tile, causal=causal)

    # Advisory cost estimate for the XLA scheduler.
    flops = int(2 * B * S * H * (3 * H)            # QKV projections
                + 4 * B * nh * S * S * D           # QK^T and PV
                + 2 * B * S * H * H)               # output projection
    transcendentals = int(B * nh * S * S)
    bytes_accessed = int(x.size * 2 * (1 + nq)
                         + B * nq * (w_qkv_heads.size + w_o_heads.size) * 2
                         + B * S * H * 2)

    return pl.pallas_call(
        kernel,
        out_shape=jax.ShapeDtypeStruct((B, S, H), jnp.bfloat16),
        grid=(B, nq, nh),
        in_specs=[
            # x rows feeding Q for this q tile.
            pl.BlockSpec((1, tq, H), lambda b, qi, h: (b, qi, 0)),
            # x rows feeding K/V: block index constant across q-tile/head axes,
            # so it is DMA'd once per batch element and stays VMEM-resident.
            pl.BlockSpec((1, S, H), lambda b, qi, h: (b, 0, 0)),
            # Per-head weight slices via index_map (no in-kernel lane slicing).
            pl.BlockSpec((1, H, 3 * D), lambda b, qi, h: (h, 0, 0)),
            pl.BlockSpec((1, D, H), lambda b, qi, h: (h, 0, 0)),
        ],
        out_specs=pl.BlockSpec((1, tq, H), lambda b, qi, h: (b, qi, 0)),
        scratch_shapes=[pltpu.VMEM((tq, H), jnp.float32)],
        compiler_params=pltpu.CompilerParams(
            dimension_semantics=("parallel", "parallel", "arbitrary"),
            vmem_limit_bytes=_vmem_limit_bytes(),
        ),
        cost_estimate=pl.CostEstimate(
            flops=flops,
            transcendentals=transcendentals,
            bytes_accessed=bytes_accessed,
        ),
    )(x, x, w_qkv_heads, w_o_heads)


# ------------------------- inner attention module -----------------------------

class MultiHeadSelfAttention:
    """LLaMA-style multi-head causal self-attention (no biases, no RoPE).

    Stand-in for the `attn` module wrapped by AttnWrapper.  Returns a tuple
    (attn_output, attn_weights, past_key_value) like HF attention modules.
    """

    def __init__(self, hidden_size, num_heads, key):
        assert hidden_size % num_heads == 0
        self.hidden_size = hidden_size
        self.num_heads = num_heads
        self.head_dim = hidden_size // num_heads
        kq, kk, kv, ko = jax.random.split(key, 4)
        init = 1.0 / math.sqrt(hidden_size)
        shape = (hidden_size, hidden_size)
        w_q = jax.random.normal(kq, shape, jnp.float32) * init
        w_k = jax.random.normal(kk, shape, jnp.float32) * init
        w_v = jax.random.normal(kv, shape, jnp.float32) * init
        w_o = jax.random.normal(ko, shape, jnp.float32) * init

        # Fold the 1/sqrt(head_dim) softmax scale into W_q once, at build time.
        w_q = w_q / math.sqrt(self.head_dim)

        H, nh, D = hidden_size, num_heads, self.head_dim

        def per_head(w):                                   # (H, H) -> (nh, H, D)
            return w.reshape(H, nh, D).transpose(1, 0, 2)

        # Per-head fused [Wq | Wk | Wv] slices, stored bf16 (MXU operand dtype),
        # laid out so each grid step DMAs exactly one head's weights.
        self.w_qkv_heads = jnp.concatenate(
            [per_head(w_q), per_head(w_k), per_head(w_v)],
            axis=-1).astype(jnp.bfloat16)                   # (nh, H, 3D)
        self.w_o_heads = w_o.reshape(nh, D, H).astype(jnp.bfloat16)   # (nh, D, H)

    def __call__(self, hidden_states, attention_mask=None, *args, **kwargs):
        # TODO(synk): attention_mask / padding and past_key_value are not folded
        # into the kernel (causal-only); extra HF outputs are returned as None.
        attn_out = fused_attention_block(
            hidden_states, self.w_qkv_heads, self.w_o_heads, causal=True)
        return (attn_out, None, None)


# ------------------------------- AttnWrapper ----------------------------------

class AttnWrapper:
    """Faithful port of the PyTorch AttnWrapper: call through, capture output[0]."""

    def __init__(self, attn):
        self.attn = attn
        self.activations = None

    def __call__(self, *args, **kwargs):
        output = self.attn(*args, **kwargs)
        self.activations = output[0]
        return output


# ----------------------------- pure-JAX reference -----------------------------

def _reference_attention(x, w_qkv_heads, w_o_heads):
    nh, H, threeD = w_qkv_heads.shape
    D = threeD // 3
    B, S, _ = x.shape
    xf = x.astype(jnp.float32)
    w = w_qkv_heads.astype(jnp.float32)
    wo = w_o_heads.astype(jnp.float32)
    q = jnp.einsum("bsh,nhd->bnsd", xf, w[:, :, :D])     # scale folded in Wq
    k = jnp.einsum("bsh,nhd->bnsd", xf, w[:, :, D:2 * D])
    v = jnp.einsum("bsh,nhd->bnsd", xf, w[:, :, 2 * D:])
    s = jnp.einsum("bnqd,bnkd->bnqk", q, k)
    mask = jnp.tril(jnp.ones((S, S), bool))
    s = jnp.where(mask, s, -1e30)
    p = jax.nn.softmax(s, axis=-1)
    ctx = jnp.einsum("bnqk,bnkd->bnqd", p, v)
    return jnp.einsum("bnqd,ndh->bqh", ctx, wo)


# ---------------------------------- main --------------------------------------

if __name__ == "__main__":
    key = jax.random.PRNGKey(0)
    k_x, k_w = jax.random.split(key)

    batch, seq, hidden, heads = 2, 8, 32, 4
    # bf16 activations end to end (halves HBM traffic for x and the output).
    x = jax.random.normal(k_x, (batch, seq, hidden), jnp.float32).astype(jnp.bfloat16)

    attn = MultiHeadSelfAttention(hidden_size=hidden, num_heads=heads, key=k_w)
    wrapper = AttnWrapper(attn)

    output = wrapper(x)
    out0 = jax.block_until_ready(output[0])

    assert out0.shape == (batch, seq, hidden)
    assert out0.dtype == jnp.bfloat16
    # The capture path stores exactly the object returned as output[0].
    assert wrapper.activations is output[0]
    assert bool(jnp.all(jnp.isfinite(out0.astype(jnp.float32))))

    # Numerical check vs. a pure-JAX fp32 reference using the same bf16 weights.
    # Tolerance covers bf16 MXU-operand rounding only (the approximate
    # reciprocal bias is removed by the Newton step in-kernel).
    ref = _reference_attention(x, attn.w_qkv_heads, attn.w_o_heads)
    err = jnp.max(jnp.abs(out0.astype(jnp.float32) - ref))
    assert bool(jnp.allclose(out0.astype(jnp.float32), ref,
                             atol=1e-1, rtol=1e-1)), float(err)

    print("KERNEL_OK")
</pallas_src>

<mosaic_0001>
module attributes {stable_mosaic.version = 11 : i64} {
  func.func @_attn_block_kernel(%arg0: i32, %arg1: i32, %arg2: i32, %arg3: memref<1x8x32xbf16, #tpu.memory_space<vmem>>, %arg4: memref<1x8x32xbf16, #tpu.memory_space<vmem>>, %arg5: memref<1x32x24xbf16, #tpu.memory_space<vmem>>, %arg6: memref<1x8x32xbf16, #tpu.memory_space<vmem>>, %arg7: memref<1x8x32xbf16, #tpu.memory_space<vmem>>, %arg8: memref<8x32xf32, #tpu.memory_space<vmem>>) attributes {dimension_semantics = [#tpu.dimension_semantics<parallel>, #tpu.dimension_semantics<parallel>, #tpu.dimension_semantics<arbitrary>], iteration_bounds = array<i64: 2, 1, 4>, scalar_prefetch = 0 : i64, scratch_operands = 1 : i64, tpu.core_type = #tpu.core_type<tc>, window_params = [{transform_indices = @transform_0, window_bounds = array<i64: 1, 8, 32>}, {transform_indices = @transform_1, window_bounds = array<i64: 1, 8, 32>}, {transform_indices = @transform_2, window_bounds = array<i64: 1, 32, 24>}, {transform_indices = @transform_3, window_bounds = array<i64: 1, 8, 32>}, {transform_indices = @transform_4, window_bounds = array<i64: 1, 8, 32>}]} {
    %c0_i32 = arith.constant 0 : i32
    %0 = arith.cmpi eq, %arg2, %c0_i32 : i32
    %1 = arith.extui %0 : i1 to i32
    %c0_i32_0 = arith.constant 0 : i32
    %2 = arith.cmpi ne, %1, %c0_i32_0 : i32
    scf.if %2 {
      %cst_29 = arith.constant 0.000000e+00 : f32
      %65 = vector.broadcast %cst_29 : f32 to vector<8x32xf32>
      %c0_30 = arith.constant 0 : index
      %c0_31 = arith.constant 0 : index
      %66 = vector.load %arg8[%c0_30, %c0_31] : memref<8x32xf32, #tpu.memory_space<vmem>>, vector<8x32xf32>
      tpu.vector_store %arg8[%c0_30, %c0_31], %65 {strides = array<i32>} : memref<8x32xf32, #tpu.memory_space<vmem>>, vector<8x32xf32>,
    } else {
    }
    %c0 = arith.constant 0 : index
    %c0_1 = arith.constant 0 : index
    %c0_2 = arith.constant 0 : index
    %3 = vector.load %arg5[%c0, %c0_1, %c0_2] : memref<1x32x24xbf16, #tpu.memory_space<vmem>>, vector<1x32x24xbf16>
    %4 = vector.shape_cast %3 : vector<1x32x24xbf16> to vector<32x24xbf16>
    %c0_3 = arith.constant 0 : index
    %c0_4 = arith.constant 0 : index
    %c0_5 = arith.constant 0 : index
    %5 = vector.load %arg3[%c0_3, %c0_4, %c0_5] : memref<1x8x32xbf16, #tpu.memory_space<vmem>>, vector<1x8x32xbf16>
    %6 = vector.shape_cast %5 : vector<1x8x32xbf16> to vector<8x32xbf16>
    %7 = vector.extract_strided_slice %4 {offsets = [0, 0], sizes = [32, 8], strides = [1, 1]} : vector<32x24xbf16> to vector<32x8xbf16>
    %cst = arith.constant dense<0.000000e+00> : vector<8x8xf32>
    %8 = tpu.matmul %6, %7, %cst {dimension_numbers = #tpu.dot_dimension_numbers<[1], [0], [0], [1], [0, 0, 1, 1], [], []>} : vector<8x32xbf16>, vector<32x8xbf16>, vector<8x8xf32> -> vector<8x8xf32>
    %9 = arith.truncf %8 : vector<8x8xf32> to vector<8x8xbf16>
    %c0_6 = arith.constant 0 : index
    %c0_7 = arith.constant 0 : index
    %c0_8 = arith.constant 0 : index
    %10 = vector.load %arg4[%c0_6, %c0_7, %c0_8] : memref<1x8x32xbf16, #tpu.memory_space<vmem>>, vector<1x8x32xbf16>
    %11 = vector.shape_cast %10 : vector<1x8x32xbf16> to vector<8x32xbf16>
    %12 = vector.extract_strided_slice %4 {offsets = [0, 8], sizes = [32, 16], strides = [1, 1]} : vector<32x24xbf16> to vector<32x16xbf16>
    %cst_9 = arith.constant dense<0.000000e+00> : vector<8x16xf32>
    %13 = tpu.matmul %11, %12, %cst_9 {dimension_numbers = #tpu.dot_dimension_numbers<[1], [0], [0], [1], [0, 0, 1, 1], [], []>} : vector<8x32xbf16>, vector<32x16xbf16>, vector<8x16xf32> -> vector<8x16xf32>
    %14 = arith.truncf %13 : vector<8x16xf32> to vector<8x16xbf16>
    %15 = vector.extract_strided_slice %14 {offsets = [0, 0], sizes = [8, 8], strides = [1, 1]} : vector<8x16xbf16> to vector<8x8xbf16>
    %16 = vector.extract_strided_slice %14 {offsets = [0, 8], sizes = [8, 8], strides = [1, 1]} : vector<8x16xbf16> to vector<8x8xbf16>
    %c8_i32 = arith.constant 8 : i32
    %17 = arith.muli %arg1, %c8_i32 : i32
    %18 = tpu.iota {dimensions = array<i32: 0>} : vector<8x8xi32>
    %19 = vector.broadcast %17 : i32 to vector<8x8xi32>
    %20 = arith.addi %19, %18 : vector<8x8xi32>
    %cst_10 = arith.constant 0xFF800000 : f32
    %21 = vector.broadcast %cst_10 : f32 to vector<8x1xf32>
    %cst_11 = arith.constant 0.000000e+00 : f32
    %22 = vector.broadcast %cst_11 : f32 to vector<8x1xf32>
    %cst_12 = arith.constant 0.000000e+00 : f32
    %23 = vector.broadcast %cst_12 : f32 to vector<8x8xf32>
    %cst_13 = arith.constant dense<0.000000e+00> : vector<8x8xf32>
    %24 = tpu.matmul %9, %15, %cst_13 {dimension_numbers = #tpu.dot_dimension_numbers<[1], [1], [0], [0], [0, 0, 1, 0], [], []>} : vector<8x8xbf16>, vector<8x8xbf16>, vector<8x8xf32> -> vector<8x8xf32>
    %25 = tpu.iota {dimensions = array<i32: 1>} : vector<8x8xi32>
    %c0_i32_14 = arith.constant 0 : i32
    %26 = vector.broadcast %c0_i32_14 : i32 to vector<8x8xi32>
    %27 = arith.addi %26, %25 : vector<8x8xi32>
    %28 = arith.cmpi sle, %27, %20 : vector<8x8xi32>
    %cst_15 = arith.constant -1.000000e+30 : f32
    %29 = vector.broadcast %cst_15 : f32 to vector<8x8xf32>
    %30 = arith.select %28, %24, %29 : vector<8x8xi1>, vector<8x8xf32>
    %cst_16 = arith.constant dense<0xFF800000> : vector<8xf32>
    %31 = vector.multi_reduction <maximumf>, %30, %cst_16 [1] : vector<8x8xf32> to vector<8xf32>
    %32 = vector.shape_cast %31 : vector<8xf32> to vector<8x1xf32>
    %33 = arith.maximumf %21, %32 : vector<8x1xf32>
    %34 = arith.subf %21, %33 : vector<8x1xf32>
    %35 = math.exp %34 : vector<8x1xf32>
    %36 = vector.broadcast %33 : vector<8x1xf32> to vector<8x8xf32>
    %37 = arith.subf %30, %36 : vector<8x8xf32>
    %38 = math.exp %37 : vector<8x8xf32>
    %39 = arith.mulf %35, %22 : vector<8x1xf32>
    %cst_17 = arith.constant dense<0.000000e+00> : vector<8xf32>
    %40 = vector.multi_reduction <add>, %38, %cst_17 [1] : vector<8x8xf32> to vector<8xf32>
    %41 = vector.shape_cast %40 : vector<8xf32> to vector<8x1xf32>
    %42 = arith.addf %39, %41 : vector<8x1xf32>
    %43 = vector.broadcast %35 : vector<8x1xf32> to vector<8x8xf32>
    %44 = arith.mulf %43, %23 : vector<8x8xf32>
    %45 = arith.truncf %38 : vector<8x8xf32> to vector<8x8xbf16>
    %cst_18 = arith.constant dense<0.000000e+00> : vector<8x8xf32>
    %46 = tpu.matmul %45, %16, %cst_18 {dimension_numbers = #tpu.dot_dimension_numbers<[1], [0], [0], [1], [0, 0, 1, 1], [], []>} : vector<8x8xbf16>, vector<8x8xbf16>, vector<8x8xf32> -> vector<8x8xf32>
    %47 = arith.addf %44, %46 : vector<8x8xf32>
    %48 = tpu.reciprocal %42 {approx = true} : vector<8x1xf32> -> vector<8x1xf32>
    %49 = arith.mulf %42, %48 : vector<8x1xf32>
    %cst_19 = arith.constant 2.000000e+00 : f32
    %50 = vector.broadcast %cst_19 : f32 to vector<8x1xf32>
    %51 = arith.subf %50, %49 : vector<8x1xf32>
    %52 = arith.mulf %48, %51 : vector<8x1xf32>
    %53 = vector.broadcast %52 : vector<8x1xf32> to vector<8x8xf32>
    %54 = arith.mulf %47, %53 : vector<8x8xf32>
    %55 = arith.truncf %54 : vector<8x8xf32> to vector<8x8xbf16>
    %c0_20 = arith.constant 0 : index
    %c0_21 = arith.constant 0 : index
    %56 = vector.load %arg8[%c0_20, %c0_21] : memref<8x32xf32, #tpu.memory_space<vmem>>, vector<8x32xf32>
    %c0_22 = arith.constant 0 : index
    %c0_23 = arith.constant 0 : index
    %c0_24 = arith.constant 0 : index
    %57 = vector.load %arg6[%c0_22, %c0_23, %c0_24] : memref<1x8x32xbf16, #tpu.memory_space<vmem>>, vector<1x8x32xbf16>
    %58 = vector.shape_cast %57 : vector<1x8x32xbf16> to vector<8x32xbf16>
    %cst_25 = arith.constant dense<0.000000e+00> : vector<8x32xf32>
    %59 = tpu.matmul %55, %58, %cst_25 {dimension_numbers = #tpu.dot_dimension_numbers<[1], [0], [0], [1], [0, 0, 1, 1], [], []>} : vector<8x8xbf16>, vector<8x32xbf16>, vector<8x32xf32> -> vector<8x32xf32>
    %60 = arith.addf %56, %59 : vector<8x32xf32>
    %c0_26 = arith.constant 0 : index
    %c0_27 = arith.constant 0 : index
    %61 = vector.load %arg8[%c0_26, %c0_27] : memref<8x32xf32, #tpu.memory_space<vmem>>, vector<8x32xf32>
    tpu.vector_store %arg8[%c0_26, %c0_27], %60 {strides = array<i32>} : memref<8x32xf32, #tpu.memory_space<vmem>>, vector<8x32xf32>,
    %c3_i32 = arith.constant 3 : i32
    %62 = arith.cmpi eq, %arg2, %c3_i32 : i32
    %63 = arith.extui %62 : i1 to i32
    %c0_i32_28 = arith.constant 0 : i32
    %64 = arith.cmpi ne, %63, %c0_i32_28 : i32
    scf.if %64 {
      %c0_29 = arith.constant 0 : index
      %c0_30 = arith.constant 0 : index
      %65 = vector.load %arg8[%c0_29, %c0_30] : memref<8x32xf32, #tpu.memory_space<vmem>>, vector<8x32xf32>
      %66 = arith.truncf %65 : vector<8x32xf32> to vector<8x32xbf16>
      %c0_31 = arith.constant 0 : index
      %c0_32 = arith.constant 0 : index
      %c0_33 = arith.constant 0 : index
      %67 = vector.load %arg7[%c0_31, %c0_32, %c0_33] : memref<1x8x32xbf16, #tpu.memory_space<vmem>>, vector<1x8x32xbf16>
      %68 = vector.shape_cast %67 : vector<1x8x32xbf16> to vector<8x32xbf16>
      %69 = vector.shape_cast %66 : vector<8x32xbf16> to vector<1x8x32xbf16>
      tpu.vector_store %arg7[%c0_31, %c0_32, %c0_33], %69 {strides = array<i32>} : memref<1x8x32xbf16, #tpu.memory_space<vmem>>, vector<1x8x32xbf16>,
    } else {
    }
    return
  }
  func.func @transform_0(%arg0: i32, %arg1: i32, %arg2: i32) -> (i32, i32, i32) {
    %c0_i32 = arith.constant 0 : i32
    %c0_i32_0 = arith.constant 0 : i32
    return %arg0, %arg1, %c0_i32 : i32, i32, i32
  }
  func.func @transform_1(%arg0: i32, %arg1: i32, %arg2: i32) -> (i32, i32, i32) {
    %c0_i32 = arith.constant 0 : i32
    %c0_i32_0 = arith.constant 0 : i32
    %c0_i32_1 = arith.constant 0 : i32
    return %arg0, %c0_i32, %c0_i32_0 : i32, i32, i32
  }
  func.func @transform_2(%arg0: i32, %arg1: i32, %arg2: i32) -> (i32, i32, i32) {
    %c0_i32 = arith.constant 0 : i32
    %c0_i32_0 = arith.constant 0 : i32
    %c0_i32_1 = arith.constant 0 : i32
    return %arg2, %c0_i32, %c0_i32_0 : i32, i32, i32
  }
  func.func @transform_3(%arg0: i32, %arg1: i32, %arg2: i32) -> (i32, i32, i32) {
    %c0_i32 = arith.constant 0 : i32
    %c0_i32_0 = arith.constant 0 : i32
    %c0_i32_1 = arith.constant 0 : i32
    return %arg2, %c0_i32, %c0_i32_0 : i32, i32, i32
  }
  func.func @transform_4(%arg0: i32, %arg1: i32, %arg2: i32) -> (i32, i32, i32) {
    %c0_i32 = arith.constant 0 : i32
    %c0_i32_0 = arith.constant 0 : i32
    return %arg0, %arg1, %c0_i32 : i32, i32, i32
  }
}

</mosaic_0001>

<bundles_post_ra>
// kernel: tpu_custom_call.1
= control target key start
LH: loop header
LB: loop body
LE: loop exit
PB: predicated region body
PF: predicated region fallthrough
CT: control target
= control target key end

     0   :  { %9 = vsyncpa [#allocation4], 0  ;;  %s1166_s0 = inlined_call_operand.vmem [shape: bf16[2,8,32], index: 0, kind: input, shape index: {}]   ;;  %s1167_s1 = inlined_call_operand.vmem [shape: bf16[2,8,32], index: 1, kind: input, shape index: {}]   ;;  %s1168_s2 = inlined_call_operand.vmem [shape: bf16[4,32,24], index: 2, kind: input, shape index: {}]   ;;  %s1169_s3 = inlined_call_operand.vmem [shape: bf16[4,8,32], index: 3, kind: input, shape index: {}]   ;;  %s1170_s4 = inlined_call_operand.hbm [shape: bf16[2,8,32], index: 4, kind: output, shape index: {}]  }
   0x1   :  { %11 = vsyncpa [#allocation4 + $0x1], 0  ;;  %s993_s15 = smov 0   ;;  %s995_s16 = smov 0  }
   0x2   :  { %s997_s17 = smov 0   ;;  %s999_s18 = smov 0  }
   0x3   :  { %s1001_s19 = smov 0   ;;  %s1003_s20 = smov 0  }
   0x4   :  { %s1005_s21 = smov 0   ;;  %s1007_s22 = smov 0  }
   0x5 LB: > { %1175 = sst [smem:[#allocation6_spill]] %s953_s20  ;;  %s713_s23 = sadd.s32 4294967295, %s961_s22   ;;  %s961_s22 = sphi %s1007_s22, %s17_s22   ;;  %s957_s21 = sphi %s1005_s21, %s1187_s21   ;;  %s953_s20 = sphi %s1003_s20, %s1186_s20   ;;  %s949_s19 = sphi %s1001_s19, %s1185_s19   ;;  %s945_s18 = sphi %s999_s18, %s1184_s18   ;;  %s941_s17 = sphi %s997_s17, %s1190_s17   ;;  %s937_s16 = sphi %s995_s16, %s1189_s16   ;;  %s933_s15 = sphi %s993_s15, %s1188_s15  }
   0x6   : > { %1176 = sst [smem:[#allocation7_spill]] %s957_s21  ;;  %s714_s24 = sadd.s32 4294967294, %s961_s22  }
   0x7   : > { %s29_s25 = sadd.s32 1, %s953_s20  ;;  %s36_s26 = sadd.s32 1, %s957_s21 }
   0x8   : > { %p30_p0 = scmp.ge.s32.totalorder %s29_s25, 4  ;;  %p161_p1 = scmp.ne.s32.totalorder %s941_s17, %s937_s16 }
   0x9   : > { %p162_p2 = scmp.eq.s32.totalorder %s713_s23, 7  ;;  %p167_p4 = scmp.ne.s32.totalorder %s937_s16, %s933_s15 }
   0xa   : > { %s1192_s25 = smov (%p30_p0, %s29_s25), 0  ;;  %s1194_s26 = smov (!%p30_p0, %s36_s26), %s957_s21 }
   0xb   : > { %1177 = sst [smem:[#allocation8_spill]] %s1192_s25  ;;  %p1042_p3 = por %p162_p2, %p161_p1 }
   0xc   : > { %p38_p5 = scmp.ge.s32.totalorder %s1194_s26, 2  ;;  %p168_p6 = scmp.eq.s32.totalorder %s714_s24, 7 }
   0xd   : > { %p717_p7 = scmp.ge.s32.totalorder %s961_s22, 1  ;;  %p218_p8 = scmp.lt.s32.totalorder %s961_s22, 9 }
   0xe   : > { %s1196_s26 = smov (%p38_p5, %s1194_s26), 0  ;;  %p1052_p9 = por %p168_p6, %p167_p4 }
   0xf   : > { %1179 = sst [smem:[#allocation9_spill]] %s1196_s26  ;;  %p219_p10 = pnand %p717_p7, %p218_p8 }
  0x10   : > { %s146_s29 = ssub.s32 %s957_s21, %s1196_s26  ;;  %s151_s30 = sadd.s32 1, %s941_s17 }
  0x11   : > { %p149_p11 = scmp.eq.s32.totalorder %s146_s29, 0  ;;  %222 = sbr.rel (%p219_p10) target bundleno = 1223 (0x4c7), region = 36 }
  0x12   : > { %s1172_s6 = sand.u32 (!%p219_p10), 1, %s937_s16   ;;  %p259_p12 = scmp.lt.s32.totalorder (!%p219_p10), %s949_s19, 1 }
  0x13   : > { %s1060_s5 = scalar_select %p149_p11, %s941_s17, %s151_s30  }
  0x14   : > { %s1066_s7 = sshll.u32 (!%p219_p10), %s1172_s6, 2  ;;  %p270_p13 = scmp.lt.s32.totalorder (!%p219_p10), %s945_s18, 3 }
  0x15   : > { %1181 = sst [smem:[#allocation10_spill]] %s1060_s5  ;;  %p724_p0 = scmp.ne.s32.totalorder (!%p219_p10), %s945_s18, 0 }
  0x18   : > { %s260_s8 = scalar_select %p259_p12, %s949_s19, 1 }
  0x19   : > { %s271_s9 = scalar_select %p270_p13, %s945_s18, 3 }
  0x1a   : > { %s719_s10 = sshll.u32 %s260_s8, 2  ;;  %s258_s8 = scalar_lea.vmem [#allocation3], %s1066_s7  ;;  %vm284_vm0 = vcmask (!%p724_p0), 261120   ;;  %v963_v0 = vmov (!%p724_p0), 0.0  }
  0x1b   : > { %s265_s13 = scalar_lea.vmem %s1166_s0, %s719_s10  ;;  %s1077_s24 = scalar_lea.vmem %s1167_s1, %s719_s10  ;;  %285 = vst.msk [vmem:[#allocation2] sm:$0xff] (!%p724_p0), %vm284_vm0, %v963_v0 }
  0x1c   : > { %s737_s29 = sshll.u32 %s271_s9, 4  ;;  %s723_s30 = sshll.u32 %s271_s9, 2 }
  0x1d   : > { %s274_s6 = scalar_lea.vmem %s1168_s2, %s737_s29  ;;  %s1085_s5 = scalar_lea.vmem %s1169_s3, %s723_s30 }
  0x1e   : > { %283 = sbr.rel (%p724_p0) target bundleno = 37 (0x25), region = 40 }
  0x25 PF: > { %v859_v1 = vld [vmem:[%s274_s6] sm:$0xff]   ;;  %s964_s10 = smov 120   ;;  %v860_v2 = vld [vmem:[%s274_s6 + $0x8] sm:$0xff]   ;;  %v965_v3 = vmov 0.0   ;;  %vm966_vm1 = vmmov 0   ;;  %vm303_vm2 = vcmask 261120   ;;  %v400_v19 = vlaneseq }
  0x26   : > { %349 = vrot.lane.b32.xlu0 %v859_v1, %s964_s10  ;;  %758 = vmatprep.subr.bf16.mxu1 %v965_v3  ;;  %v290_v4 = vld [vmem:[%s265_s13] sm:$0xf]  ;;  %vm404_vm3 = vcmask 64512   ;;  %vm476_vm5 = vcmask 1043456   ;;  %p732_p1 = scmp.ne.s32.totalorder %s945_s18, 3 }
  0x27   : > { %750 = vmatprep.subr.bf16.mxu0 %v965_v3  ;;  %762 = vmatprep.mubr.msk.bf16.mxu1 %vm966_vm1, %v965_v3  ;;  %v348_v7 = vld [vmem:[%s1077_s24] sm:$0xf]  ;;  %v401_v20 = vshrl.u32 %v400_v19, 7  ;;  %v452_v21 = vand.u32 127, %v400_v19  ;;  %vm583_vm6 = vcmask (!%p732_p1), 257024  }
  0x28   : > { %751 = vmatpush3.bf16.msra.mxu0 %v859_v1  ;;  %754 = vmatprep.mubr.msk.bf16.mxu0 %vm966_vm1, %v965_v3  ;;  %v528_v28 = vld [vmem:[%s1085_s5] sm:$0xf] }
  0x29   : > { %752 = vmatprep.subr.bf16.mxu0 %v965_v3  ;;  %vm453_vm4 = vcmp.le.s32.totalorder %v452_v21, %v401_v20  ;;  %v533_v29 = vsel %vm476_vm5, %v528_v28, 0  ;;  %v527_v55 = vld [vmem:[#allocation2] sm:$0xff] }
  0x2a   : > { %351 = vrot.lane.b32.xlu0 %v860_v2, %s964_s10 }
  0x2c   : > { %753 = vmatpush3.bf16.msra.mxu0 %v860_v2 }
  0x2d   : > { %766 = vmatprep.subr.bf16.mxu0 %v965_v3 }
  0x2f   : > { %755 = vmatmul.mubr.msk.bf16.vlgmr.msra.gmra.mrb[0].mxu0 %vm303_vm2, %v290_v4 }
  0x30   : > { %768 = vmatprep.mubr.msk.bf16.mxu0 %vm966_vm1, %v965_v3 }
  0x98   : > { %v350_v5 = vpop.permute.xlu0 %349 }
  0x99   : > { %759 = vmatpush3.bf16.msra.mxu1 %v350_v5 }
  0x9a   : > { %760 = vmatprep.subr.bf16.mxu1 %v965_v3 }
  0x9c   : > { %v352_v6 = vpop.permute.xlu0 %351 }
  0x9d   : > { %761 = vmatpush3.bf16.msra.mxu1 %v352_v6 }
  0x9e   : > { %772 = vmatprep.subr.bf16.mxu1 %v965_v3 }
  0xa0   : > { %763 = vmatmul.mubr.msk.bf16.vlgmr.msra.gmra.mrb[0].mxu1 %vm303_vm2, %v348_v7 }
  0xa1   : > { %774 = vmatprep.mubr.msk.bf16.mxu1 %vm966_vm1, %v965_v3 }
 0x102   : > { %v341_v8 = vpop.f32.mrb[0].mxu0 }
 0x103   : > { %v756_v9 = vpop.f32.mrb[1].mxu0  ;;  %v347_v18 = vpack.c.bf16 %v341_v8, %v341_v8 }
 0x104   : > { %v344_v10 = vpop.f32.mrb[2].mxu0 }
 0x105   : > { %v757_v11 = vpop.f32.mrb[3].mxu0 }
 0x173   : > { %v392_v12 = vpop.f32.mrb[0].mxu1 }
 0x174   : > { %v398_v13 = vpack.c.bf16 %v392_v12, %v392_v12  ;;  %v764_v14 = vpop.f32.mrb[1].mxu1 }
 0x175   : > { %v395_v15 = vpop.f32.mrb[2].mxu1 }
 0x176   : > { %v409_v16 = vsel %vm404_vm3, %v398_v13, 0  ;;  %v765_v17 = vpop.f32.mrb[3].mxu1 }
 0x177   : > { %767 = vmatpush3.bf16.xpose.msra.mxu0 %v409_v16 }
 0x178   : > { %778 = vmatprep.subr.bf16.mxu0 %v965_v3 }
 0x17e   : > { %769 = vmatmul.mubr.msk.bf16.vlgmr.msra.gmra.mrb[4].mxu0 %vm404_vm3, %v347_v18 }
 0x17f   : > { %780 = vmatprep.mubr.msk.bf16.mxu0 %vm966_vm1, %v965_v3  ;;  %779 = vmatpush3.bf16.msra.mxu0 %v533_v29 }
 0x251   : > { %v445_v22 = vpop.f32.mrb[4].mxu0 }
 0x252   : > { %v454_v23 = vsel %vm453_vm4, %v445_v22, -1e+30  ;;  %v770_v24 = vpop.f32.mrb[5].mxu0 }
 0x253   : > { %v448_v25 = vpop.f32.mrb[6].mxu0  ;;  %v455_v26 = vsel %vm404_vm3, %v454_v23, -inf }
 0x254   : > { %456 = vmax.xlane.f32.xlu1 %v455_v26  ;;  %v771_v27 = vpop.f32.mrb[7].mxu0 }
 0x265   : > { %471 = vrot.lane.b32.xlu1 %v398_v13, %s964_s10 }
 0x2e1   : > { %v457_v30 = vpop.xlane.xlu1 %456 }
 0x2e2   : > { %v461_v31 = vsub.f32 %v454_v23, %v457_v30  ;;  %v458_v38 = vsub.f32 -inf, %v457_v30 }
 0x2e4   : > { %v462_v32 = vmul.f32 1.442695, %v461_v31  ;;  %v459_v39 = vmul.f32 1.442695, %v458_v38 }
 0x2e5   : > { %v472_v33 = vpop.permute.xlu1 %471 }
 0x2e6   : > { %v478_v34 = vsel %vm476_vm5, %v472_v33, 0  ;;  %861 = vpow2.f32 %v462_v32 }
 0x2e7   : > { %773 = vmatpush3.bf16.msra.mxu1 %v478_v34  ;;  %863 = vpow2.f32 %v459_v39 }
 0x2f0   : > { %v862_v35 = vpop.eup %861 }
 0x2f1   : > { %v465_v36 = vsel %vm404_vm3, %v862_v35, 0.0  ;;  %v469_v37 = vpack.c.bf16 %v862_v35, %v862_v35  ;;  %v864_v40 = vpop.eup %863 }
 0x2f2   : > { %466 = vadd.xlane.f32.xlu0 %v465_v36  ;;  %v464_v42 = vmul.f32 0.0, %v864_v40 }
 0x2f3   : > { %775 = vmatmul.mubr.msk.bf16.vlgmr.msra.gmra.mrb[4].mxu1 %vm404_vm3, %v469_v37 }
 0x37f   : > { %v467_v41 = vpop.xlane.xlu0 %466 }
 0x380   : > { %v468_v43 = vadd.f32 %v467_v41, %v464_v42 }
 0x382   : > { %865 = vrcp.f32 %v468_v43 }
 0x38c   : > { %v866_v44 = vpop.eup %865 }
 0x38d   : > { %v522_v45 = vmul.f32 %v866_v44, %v468_v43 }
 0x38f   : > { %v523_v46 = vsub.f32 2.0, %v522_v45 }
 0x391   : > { %v524_v49 = vmul.f32 %v866_v44, %v523_v46 }
 0x3c6   : > { %v514_v47 = vpop.f32.mrb[4].mxu1 }
 0x3c7   : > { %v520_v48 = vadd.f32 %v514_v47, %v464_v42  ;;  %v776_v50 = vpop.f32.mrb[5].mxu1 }
 0x3c8   : > { %v517_v51 = vpop.f32.mrb[6].mxu1 }
 0x3c9   : > { %v525_v52 = vmul.f32 %v524_v49, %v520_v48  ;;  %v777_v53 = vpop.f32.mrb[7].mxu1 }
 0x3cb   : > { %v526_v54 = vpack.c.bf16 %v525_v52, %v525_v52 }
 0x3cd   : > { %781 = vmatmul.mubr.msk.bf16.vlgmr.msra.gmra.mrb[8].mxu0 %vm404_vm3, %v526_v54 }
 0x49d   : > { %580 = sbr.rel (%p732_p1) target bundleno = 1198 (0x4ae), region = 44 }
 0x4a0   : > { %v569_v56 = vpop.f32.mrb[8].mxu0 }
 0x4a1   : > { %v575_v57 = vadd.f32 %v569_v56, %v527_v55  ;;  %v782_v58 = vpop.f32.mrb[9].mxu0 }
 0x4a2   : > { %v572_v59 = vpop.f32.mrb[10].mxu0 }
 0x4a3   : > { %576 = vst.msk [vmem:[#allocation2] sm:$0xff] %vm303_vm2, %v575_v57  ;;  %v783_v60 = vpop.f32.mrb[11].mxu0 }
 0x4aa   : > { %v581_v61 = vld [vmem:[#allocation2] sm:$0xff] }
 0x4ab   : > { %v582_v62 = vpack.c.bf16 %v581_v61, %v581_v61 }
 0x4ad   : > { %584 = vst.msk [vmem:[%s258_s8] sm:$0xf] %vm583_vm6, %v582_v62 }
 0x4ae PF: > { %s734_s20 = sshll.u32 %s949_s19, 6  ;;  %s600_s18 = sshll.u32 %s258_s8, 4  ;;  %s601_s18 = int_to_ptr.vmem [resolvable:$true] %s600_s18 }
 0x4af   : > { %s1115_s26 = scalar_lea.hbm %s1170_s4, %s734_s20  ;;  %s1182_s5 = sand.u32 1, %s937_s16  }
 0x4b0   : > { %s586_s6 = scalar_lea.sflag [#allocation4], %s1182_s5  ;;  %s867_s9 = scalar_lea.vmem %s601_s18, 64 }
 0x4b1   : > { %p868_p2 = scmp.ne.s32.totalorder %s601_s18, %s867_s9  ;;  %s967_s11 = smov [#allocation3]  }
 0x4b2   : > { %s871_s12 = sshll.u32 %s967_s11, 4  ;;  %s872_s12 = int_to_ptr.vmem [resolvable:$false] %s871_s12 }
 0x4b3   : > { %p869_p4 = pnand %p868_p2, %p1042_p3  ;;  %s873_s13 = scalar_lea.vmem %s872_s12, 128 }
 0x4b4   : > { %p874_p6 = scmp.lt.s32.totalorder %s601_s18, %s872_s12  ;;  %p875_p7 = scmp.lt.s32.totalorder %s873_s13, %s867_s9 }
 0x4b5   : > { %p870_p5 = pneg %p869_p4 }
 0x4b6   : > { %p876_p8 = por %p875_p7, %p874_p6 }
 0x4b8   : > { %p877_p10 = pnand %p876_p8, %p870_p5 }
 0x4ba   : > { %880 = shalt.err (!%p877_p10)
}
 0x4bb   : > { %s881_s19 = scalar_lea.hbm %s1115_s26, 64  ;;  %s885_s23 = scalar_lea.hbm %s1170_s4, 128 }
 0x4bc   : > { %p882_p11 = scmp.ne.s32.totalorder %s1115_s26, %s881_s19  ;;  %p886_p0 = scmp.lt.u32.totalorder %s1115_s26, %s1170_s4 }
 0x4bd   : > { %p887_p1 = scmp.lt.u32.totalorder %s885_s23, %s881_s19  ;;  %p889_p4 = scmp.lt.u32.totalorder %s881_s19, %s1115_s26 }
 0x4be   : > { %p883_p12 = pnand %p882_p11, %p1042_p3 }
 0x4bf   : > { %p888_p2 = por %p887_p1, %p886_p0 }
 0x4c0   : > { %p884_p13 = pneg %p883_p12 }
 0x4c1   : > { %p890_p5 = por %p889_p4, %p888_p2 }
 0x4c3   : > { %p891_p6 = pnand %p890_p5, %p884_p13 }
 0x4c5   : > { %894 = shalt.err (!%p891_p6)
}
 0x4c6   : > { %784 = dma.vmem_to_hbm [thread:$0]  (%p1042_p3), %s601_s18, 64, %s1115_s26, %s586_s6  }
 0x4c7 PF: > { %p790_p7 = scmp.ge.s32.totalorder %s961_s22, 2  ;;  %s612_s30 = sand.u32 1, %s933_s15  }
 0x4c8   : > { %s613_s8 = scalar_lea.sflag [#allocation4], %s612_s30 }
 0x4c9   : > { %p787_p8 = pnand %p790_p7, %p1052_p9 }
 0x4cb   : > { %928 = dma.done.wait (!%p787_p8), %s613_s8, 64  }
 0x4cc   : > { %930 = vsyncadd (!%p787_p8), %s613_s8, 4294967232  ;;  %s17_s22 = sadd.s32 1, %s961_s22   ;;  %s1183_s10 = sld [smem:[#allocation10_spill]] }
 0x4cd   : > { %p14_p10 = scmp.ge.s32.totalorder %s17_s22, 10   ;;  %s1184_s18 = sld [smem:[#allocation6_spill]] }
 0x4ce   : > { %s1185_s19 = sld [smem:[#allocation7_spill]]  ;;  %s1186_s20 = sld [smem:[#allocation8_spill]] }
 0x4cf   : > { %s1187_s21 = sld [smem:[#allocation9_spill]]  ;;  %s1188_s15 = smov %s937_s16 }
 0x4d0   : > { %s1189_s16 = smov %s941_s17  ;;  %16 = sbr.rel (!%p14_p10) target bundleno = 5 (0x5), region = 88 }
 0x4d2   : > { %s1190_s17 = smov %s1183_s10 }
 0x4d7   :  { %618 = vsyncpa [#allocation4], 1 }
 0x4d8   :  { %620 = vsyncpa [#allocation4 + $0x1], 1 }

</bundles_post_ra>
